<compile_context>
chip_gen: v6e
topology: v6e:2x2x1
jax: 0.10.0
libtpu: 0.0.40
codegen_flags: <defaults>
</compile_context>

<pallas_src>
import jax
import jax.numpy as jnp
from jax import lax
from jax.experimental import pallas as pl
from jax.experimental.pallas import tpu as pltpu


def _round_up(x, m):
    return (x + m - 1) // m * m


def _cdiv(a, b):
    return -(-a // b)


def _make_kernel(*, tm, tn, num_classes, b_axis, c_axis, resident_rows, ragged_c):
    """Build the (B-tile, C-tile) grid-step kernel.

    x_ref:      (tm, D)  bf16   activation tile
    w_ref:      (D, tn)  bf16   weight tile (pre-transposed; last tile may be ragged)
    b_ref:      (1, tn)  f32    bias tile
    labels_ref: (tm,1) or (B_pad,1) int32  class indices (padded rows = -1)
    loss_ref:   (tm,1) or (B_pad,1) f32    per-row loss (written on last C step)
    m/l/tl_ref: per-row running max / exp-sum / true-class logit (same row layout as loss)
    """

    def kernel(x_ref, w_ref, b_ref, labels_ref, loss_ref, m_ref, l_ref, tl_ref):
        i = pl.program_id(b_axis)              # batch-tile index
        j = pl.program_id(c_axis)              # class-tile index (reduction axis)
        last_j = pl.num_programs(c_axis) - 1

        if resident_rows:
            # Full-batch state resident in VMEM ("B-inner" order): slice this tile's rows.
            rows = pl.ds(pl.multiple_of(i * tm, tm), tm)
            rd = lambda ref: ref[rows, :]
            def wr(ref, v):
                ref[rows, :] = v
        else:
            rd = lambda ref: ref[...]
            def wr(ref, v):
                ref[...] = v

        @pl.when(j == 0)
        def _():
            wr(m_ref, jnp.full((tm, 1), -jnp.inf, jnp.float32))
            wr(l_ref, jnp.zeros((tm, 1), jnp.float32))
            wr(tl_ref, jnp.zeros((tm, 1), jnp.float32))

        # MXU matmul: bf16 inputs, f32 accumulation; bias added in f32.
        logits = jnp.dot(x_ref[...], w_ref[...], preferred_element_type=jnp.float32)
        logits = logits + b_ref[...]                                  # (tm, tn) f32

        cols = lax.broadcasted_iota(jnp.int32, (tm, tn), 1)
        if ragged_c:
            # Mask out-of-range class columns of the (only possible) ragged last tile.
            # Scalar RHS -> no per-step offset add into the iota vregs.
            logits = jnp.where(cols < (num_classes - j * tn), logits, -jnp.inf)

        # --- online logsumexp update ---
        m_prev = rd(m_ref)
        m_new = jnp.maximum(m_prev, jnp.max(logits, axis=-1, keepdims=True))
        alpha = jnp.exp(m_prev - m_new)
        wr(l_ref, alpha * rd(l_ref)
           + jnp.sum(jnp.exp(logits - m_new), axis=-1, keepdims=True))
        wr(m_ref, m_new)

        # --- true-class logit: fold the tile offset into the (tm,1) labels, not the iota ---
        label_local = rd(labels_ref) - j * tn
        wr(tl_ref, rd(tl_ref)
           + jnp.sum(jnp.where(cols == label_local, logits, 0.0), axis=-1, keepdims=True))

        # --- finalize per-row loss once, on the last C tile ---
        @pl.when(j == last_j)
        def _():
            wr(loss_ref, rd(m_ref) + jnp.log(rd(l_ref)) - rd(tl_ref))

    return kernel


def stand_cross_entropy_loss(x, weight_t, bias, labels, *, tm=256, tn=512,
                             order=None, vmem_fraction=0.75):
    """Mean softmax cross-entropy of Linear(x) vs integer labels (PyTorch StandCrossEntropyLoss).

    x:        (B, D) float (bf16 preferred; f32 is cast once)
    weight_t: (D, C) float = transposed nn.Linear weight (supply bf16 to skip the cast pass)
    bias:     (C,)   float
    labels:   (B,)   int
    order:    None (auto) | "c_inner" | "b_inner" grid ordering override
    Returns scalar f32.
    """
    B, D = x.shape
    Dw, C = weight_t.shape
    assert Dw == D, (Dw, D)

    # MXU-friendly tile clamps: tm multiple of 8, tn multiple of 128.
    tm = _round_up(max(8, min(tm, _round_up(B, 8))), 8)
    tn = _round_up(max(128, min(tn, _round_up(C, 128))), 128)

    # VMEM budget from the actual chip (128 MiB v5e/v6e, 64 MiB per-core v7x).
    try:
        phys_vmem = int(pltpu.get_tpu_info().vmem_capacity_bytes)
    except Exception:
        phys_vmem = 64 * 1024 * 1024     # conservative fallback (v7x per-core)
    budget = int(phys_vmem * vmem_fraction)

    def tile_vmem(tm_, tn_):
        # double-buffered bf16 x / W tiles + f32 bias tile (sublane-padded).
        return 2 * tm_ * D * 2 + 2 * D * tn_ * 2 + 2 * 8 * tn_ * 4

    # Shrink tiles if the streamed tiles would blow the VMEM budget (tn first, then tm).
    while tile_vmem(tm, tn) > budget:
        if tn > 128:
            tn = max(128, _round_up(tn // 2, 128))
        elif tm > 8:
            tm = max(8, _round_up(tm // 2, 8))
        else:
            break

    nbt = _cdiv(B, tm)
    B_pad = nbt * tm
    nct = _cdiv(C, tn)
    ragged_c = (C % tn) != 0

    # --- inputs: never pad/copy the (D,C) weight; pad x/labels only when B is ragged ---
    w_bf16 = weight_t if weight_t.dtype == jnp.bfloat16 else weight_t.astype(jnp.bfloat16)
    b_2d = bias.astype(jnp.float32).reshape(1, C)
    if B_pad != B:
        # Padded rows: zero activations, label -1 -> per-row "loss" = logsumexp (garbage),
        # safe only because we slice per_row[:B] below.
        x_p = jnp.zeros((B_pad, D), jnp.bfloat16).at[:B].set(x.astype(jnp.bfloat16))
        lbl_p = jnp.full((B_pad, 1), -1, jnp.int32).at[:B, 0].set(labels.astype(jnp.int32))
    else:
        x_p = x if x.dtype == jnp.bfloat16 else x.astype(jnp.bfloat16)
        lbl_p = labels.astype(jnp.int32).reshape(B, 1)

    # --- grid-order choice: stream the larger operand exactly once ---
    w_bytes = D * C * 2
    x_bytes = B_pad * D * 2
    c_inner_traffic = (nbt if nct > 1 else 1) * w_bytes + x_bytes
    b_inner_traffic = w_bytes + (nct if nbt > 1 else 1) * x_bytes
    # (N,1) f32 tiles lane-pad to 128: m/l/tl/loss/labels resident cost for the B-inner order.
    resident_bytes = 5 * _round_up(B_pad, 8) * 128 * 4
    if order is None:
        b_inner = (nbt > 1 and b_inner_traffic < c_inner_traffic
                   and tile_vmem(tm, tn) + resident_bytes <= budget)
    else:
        b_inner = (order == "b_inner")

    if b_inner:
        # Weight read exactly once: C tiles outer, B tiles inner; full-batch state in scratch,
        # loss output resident (single block, written back once).
        grid = (nct, nbt)
        b_axis, c_axis = 1, 0
        in_specs = [
            pl.BlockSpec((tm, D), lambda j, i: (i, 0)),       # x streamed per step
            pl.BlockSpec((D, tn), lambda j, i: (0, j)),       # weight: one fetch per C tile
            pl.BlockSpec((1, tn), lambda j, i: (0, j)),       # bias tile
            pl.BlockSpec((B_pad, 1), lambda j, i: (0, 0)),    # labels resident
        ]
        out_specs = pl.BlockSpec((B_pad, 1), lambda j, i: (0, 0))
        scratch = [pltpu.VMEM((B_pad, 1), jnp.float32)] * 3
        # Resident shared output block -> keep both axes "arbitrary" (see v7x TODO above).
        dims = ("arbitrary", "arbitrary")
    else:
        # Classic order: B tiles outer, C (reduction) tiles innermost; per-tile state/output.
        grid = (nbt, nct)
        b_axis, c_axis = 0, 1
        in_specs = [
            pl.BlockSpec((tm, D), lambda i, j: (i, 0)),
            pl.BlockSpec((D, tn), lambda i, j: (0, j)),
            pl.BlockSpec((1, tn), lambda i, j: (0, j)),
            pl.BlockSpec((tm, 1), lambda i, j: (i, 0)),
        ]
        out_specs = pl.BlockSpec((tm, 1), lambda i, j: (i, 0))
        scratch = [pltpu.VMEM((tm, 1), jnp.float32)] * 3
        dims = ("parallel", "arbitrary")

    need = tile_vmem(tm, tn) + (resident_bytes if b_inner else 6 * _round_up(tm, 8) * 128 * 4)
    vmem_limit = int(min(phys_vmem * 0.9, max(32 * 1024 * 1024, need + (8 << 20))))

    kernel = _make_kernel(tm=tm, tn=tn, num_classes=C, b_axis=b_axis, c_axis=c_axis,
                          resident_rows=b_inner, ragged_c=ragged_c)

    cost = pl.CostEstimate(
        flops=2 * B_pad * D * (nct * tn),
        transcendentals=B_pad * nct * tn,
        bytes_accessed=int((b_inner_traffic if b_inner else c_inner_traffic)
                           + B_pad * 8 + C * 6),
    )

    per_row = pl.pallas_call(
        kernel,
        out_shape=jax.ShapeDtypeStruct((B_pad, 1), jnp.float32),
        grid_spec=pltpu.PrefetchScalarGridSpec(
            num_scalar_prefetch=0,
            grid=grid,
            in_specs=in_specs,
            out_specs=out_specs,
            scratch_shapes=scratch,
        ),
        compiler_params=pltpu.CompilerParams(
            dimension_semantics=dims,
            vmem_limit_bytes=vmem_limit,
        ),
        cost_estimate=cost,
    )(x_p, w_bf16, b_2d, lbl_p)

    # Mean over the real rows only; padded rows carry garbage per-row values by design.
    return jnp.sum(per_row[:B, 0]) / B


def init_linear_params(key, in_features, out_features, dtype=jnp.bfloat16):
    """nn.Linear default init: U(-1/sqrt(in), 1/sqrt(in)).  Weight returned transposed
    (in, out) and pre-cast (bf16 by default) so the kernel wrapper never copies it."""
    kw, kb = jax.random.split(key)
    bound = 1.0 / jnp.sqrt(jnp.float32(in_features))
    weight_t = jax.random.uniform(kw, (in_features, out_features), jnp.float32,
                                  -bound, bound).astype(dtype)
    bias = jax.random.uniform(kb, (out_features,), jnp.float32, -bound, bound)
    return weight_t, bias


def _reference_loss(x, weight_t, bias, labels):
    """Precision-matched pure-JAX reference (bf16 MXU inputs, f32 accumulation)."""
    logits = jnp.dot(x.astype(jnp.bfloat16), weight_t.astype(jnp.bfloat16),
                     preferred_element_type=jnp.float32) + bias.astype(jnp.float32)
    lse = jax.nn.logsumexp(logits, axis=-1)
    return jnp.mean(lse - logits[jnp.arange(x.shape[0]), labels])


if __name__ == "__main__":
    key = jax.random.PRNGKey(0)
    k_x1, k_l1, k_p1, k_x2, k_l2, k_p2 = jax.random.split(key, 6)

    # Case 1: ragged batch (padded to 32), 3 class tiles with a ragged last tile; the
    # traffic heuristic picks the B-inner order (weight streamed exactly once).
    B1, D1, C1 = 24, 32, 300
    x1 = jax.random.normal(k_x1, (B1, D1), jnp.float32)
    lbl1 = jax.random.randint(k_l1, (B1,), 0, C1, jnp.int32)
    w1, b1 = init_linear_params(k_p1, D1, C1)
    loss1 = stand_cross_entropy_loss(x1, w1, b1, lbl1, tm=16, tn=128)
    ref1 = _reference_loss(x1, w1, b1, lbl1)

    # Case 2: aligned batch, single class tile -> C-inner order (per-tile state, parallel B).
    B2, D2, C2 = 64, 48, 128
    x2 = jax.random.normal(k_x2, (B2, D2), jnp.float32)
    lbl2 = jax.random.randint(k_l2, (B2,), 0, C2, jnp.int32)
    w2, b2 = init_linear_params(k_p2, D2, C2)
    loss2 = stand_cross_entropy_loss(x2, w2, b2, lbl2, tm=16, tn=128)
    ref2 = _reference_loss(x2, w2, b2, lbl2)

    # Case 3: same data as case 1 but forced C-inner order -> exercises the multi-C-tile
    # online softmax with per-tile scratch as well.
    loss3 = stand_cross_entropy_loss(x1, w1, b1, lbl1, tm=16, tn=128, order="c_inner")

    jax.block_until_ready((loss1, loss2, loss3))
    assert jnp.allclose(loss1, ref1, rtol=1e-3, atol=1e-3), (loss1, ref1)
    assert jnp.allclose(loss2, ref2, rtol=1e-3, atol=1e-3), (loss2, ref2)
    assert jnp.allclose(loss3, ref1, rtol=1e-3, atol=1e-3), (loss3, ref1)
    print("KERNEL_OK")
</pallas_src>

<mosaic_0001>
module attributes {stable_mosaic.version = 11 : i64} {
  func.func @kernel(%arg0: i32, %arg1: i32, %arg2: memref<16x32xbf16, #tpu.memory_space<vmem>>, %arg3: memref<32x128xbf16, #tpu.memory_space<vmem>>, %arg4: memref<1x128xf32, #tpu.memory_space<vmem>>, %arg5: memref<32x1xi32, #tpu.memory_space<vmem>>, %arg6: memref<32x1xf32, #tpu.memory_space<vmem>>, %arg7: memref<32x1xf32, #tpu.memory_space<vmem>>, %arg8: memref<32x1xf32, #tpu.memory_space<vmem>>, %arg9: memref<32x1xf32, #tpu.memory_space<vmem>>) attributes {dimension_semantics = [#tpu.dimension_semantics<arbitrary>, #tpu.dimension_semantics<arbitrary>], iteration_bounds = array<i64: 3, 2>, scalar_prefetch = 0 : i64, scratch_operands = 3 : i64, tpu.core_type = #tpu.core_type<tc>, window_params = [{transform_indices = @transform_0, window_bounds = array<i64: 16, 32>}, {transform_indices = @transform_1, window_bounds = array<i64: 32, 128>}, {transform_indices = @transform_2, window_bounds = array<i64: 1, 128>}, {pipeline_mode = #tpu.pipeline_mode<synchronous>, transform_indices = @transform_3, window_bounds = array<i64: 32, 1>}, {pipeline_mode = #tpu.pipeline_mode<synchronous>, transform_indices = @transform_4, window_bounds = array<i64: 32, 1>}]} {
    %c16_i32 = arith.constant 16 : i32
    %0 = arith.muli %arg1, %c16_i32 : i32
    %1 = tpu.assume_multiple %0, 16 : i32
    %c0_i32 = arith.constant 0 : i32
    %2 = arith.cmpi eq, %arg0, %c0_i32 : i32
    %3 = arith.extui %2 : i1 to i32
    %c0_i32_0 = arith.constant 0 : i32
    %4 = arith.cmpi ne, %3, %c0_i32_0 : i32
    scf.if %4 {
      %cst_20 = arith.constant 0xFF800000 : f32
      %57 = vector.broadcast %cst_20 : f32 to vector<16x1xf32>
      %58 = arith.index_cast %1 : i32 to index
      %c0_21 = arith.constant 0 : index
      %59 = vector.load %arg7[%58, %c0_21] : memref<32x1xf32, #tpu.memory_space<vmem>>, vector<16x1xf32>
      tpu.vector_store %arg7[%58, %c0_21], %57 {strides = array<i32>} : memref<32x1xf32, #tpu.memory_space<vmem>>, vector<16x1xf32>,
      %cst_22 = arith.constant 0.000000e+00 : f32
      %60 = vector.broadcast %cst_22 : f32 to vector<16x1xf32>
      %61 = arith.index_cast %1 : i32 to index
      %c0_23 = arith.constant 0 : index
      %62 = vector.load %arg8[%61, %c0_23] : memref<32x1xf32, #tpu.memory_space<vmem>>, vector<16x1xf32>
      tpu.vector_store %arg8[%61, %c0_23], %60 {strides = array<i32>} : memref<32x1xf32, #tpu.memory_space<vmem>>, vector<16x1xf32>,
      %cst_24 = arith.constant 0.000000e+00 : f32
      %63 = vector.broadcast %cst_24 : f32 to vector<16x1xf32>
      %64 = arith.index_cast %1 : i32 to index
      %c0_25 = arith.constant 0 : index
      %65 = vector.load %arg9[%64, %c0_25] : memref<32x1xf32, #tpu.memory_space<vmem>>, vector<16x1xf32>
      tpu.vector_store %arg9[%64, %c0_25], %63 {strides = array<i32>} : memref<32x1xf32, #tpu.memory_space<vmem>>, vector<16x1xf32>,
    } else {
    }
    %c0 = arith.constant 0 : index
    %c0_1 = arith.constant 0 : index
    %5 = vector.load %arg2[%c0, %c0_1] : memref<16x32xbf16, #tpu.memory_space<vmem>>, vector<16x32xbf16>
    %c0_2 = arith.constant 0 : index
    %c0_3 = arith.constant 0 : index
    %6 = vector.load %arg3[%c0_2, %c0_3] : memref<32x128xbf16, #tpu.memory_space<vmem>>, vector<32x128xbf16>
    %cst = arith.constant dense<0.000000e+00> : vector<16x128xf32>
    %7 = tpu.matmul %5, %6, %cst {dimension_numbers = #tpu.dot_dimension_numbers<[1], [0], [0], [1], [0, 0, 1, 1], [], []>} : vector<16x32xbf16>, vector<32x128xbf16>, vector<16x128xf32> -> vector<16x128xf32>
    %c0_4 = arith.constant 0 : index
    %c0_5 = arith.constant 0 : index
    %8 = vector.load %arg4[%c0_4, %c0_5] : memref<1x128xf32, #tpu.memory_space<vmem>>, vector<1x128xf32>
    %9 = vector.broadcast %8 : vector<1x128xf32> to vector<16x128xf32>
    %10 = arith.addf %7, %9 : vector<16x128xf32>
    %11 = tpu.iota {dimensions = array<i32: 1>} : vector<16x128xi32>
    %c128_i32 = arith.constant 128 : i32
    %12 = arith.muli %arg0, %c128_i32 : i32
    %c300_i32 = arith.constant 300 : i32
    %13 = arith.subi %c300_i32, %12 : i32
    %14 = vector.broadcast %13 : i32 to vector<16x128xi32>
    %15 = arith.cmpi slt, %11, %14 : vector<16x128xi32>
    %cst_6 = arith.constant 0xFF800000 : f32
    %16 = vector.broadcast %cst_6 : f32 to vector<16x128xf32>
    %17 = arith.select %15, %10, %16 : vector<16x128xi1>, vector<16x128xf32>
    %18 = arith.index_cast %1 : i32 to index
    %c0_7 = arith.constant 0 : index
    %19 = vector.load %arg7[%18, %c0_7] : memref<32x1xf32, #tpu.memory_space<vmem>>, vector<16x1xf32>
    %cst_8 = arith.constant dense<0xFF800000> : vector<16xf32>
    %20 = vector.multi_reduction <maximumf>, %17, %cst_8 [1] : vector<16x128xf32> to vector<16xf32>
    %21 = vector.shape_cast %20 : vector<16xf32> to vector<16x1xf32>
    %22 = arith.maximumf %19, %21 : vector<16x1xf32>
    %23 = arith.subf %19, %22 : vector<16x1xf32>
    %24 = math.exp %23 : vector<16x1xf32>
    %25 = arith.index_cast %1 : i32 to index
    %c0_9 = arith.constant 0 : index
    %26 = vector.load %arg8[%25, %c0_9] : memref<32x1xf32, #tpu.memory_space<vmem>>, vector<16x1xf32>
    %27 = arith.mulf %24, %26 : vector<16x1xf32>
    %28 = vector.broadcast %22 : vector<16x1xf32> to vector<16x128xf32>
    %29 = arith.subf %17, %28 : vector<16x128xf32>
    %30 = math.exp %29 : vector<16x128xf32>
    %cst_10 = arith.constant dense<0.000000e+00> : vector<16xf32>
    %31 = vector.multi_reduction <add>, %30, %cst_10 [1] : vector<16x128xf32> to vector<16xf32>
    %32 = vector.shape_cast %31 : vector<16xf32> to vector<16x1xf32>
    %33 = arith.addf %27, %32 : vector<16x1xf32>
    %34 = arith.index_cast %1 : i32 to index
    %c0_11 = arith.constant 0 : index
    %35 = vector.load %arg8[%34, %c0_11] : memref<32x1xf32, #tpu.memory_space<vmem>>, vector<16x1xf32>
    tpu.vector_store %arg8[%34, %c0_11], %33 {strides = array<i32>} : memref<32x1xf32, #tpu.memory_space<vmem>>, vector<16x1xf32>,
    %36 = arith.index_cast %1 : i32 to index
    %c0_12 = arith.constant 0 : index
    %37 = vector.load %arg7[%36, %c0_12] : memref<32x1xf32, #tpu.memory_space<vmem>>, vector<16x1xf32>
    tpu.vector_store %arg7[%36, %c0_12], %22 {strides = array<i32>} : memref<32x1xf32, #tpu.memory_space<vmem>>, vector<16x1xf32>,
    %38 = arith.index_cast %1 : i32 to index
    %c0_13 = arith.constant 0 : index
    %39 = vector.load %arg5[%38, %c0_13] : memref<32x1xi32, #tpu.memory_space<vmem>>, vector<16x1xi32>
    %c128_i32_14 = arith.constant 128 : i32
    %40 = arith.muli %arg0, %c128_i32_14 : i32
    %41 = vector.broadcast %40 : i32 to vector<16x1xi32>
    %42 = arith.subi %39, %41 : vector<16x1xi32>
    %43 = arith.index_cast %1 : i32 to index
    %c0_15 = arith.constant 0 : index
    %44 = vector.load %arg9[%43, %c0_15] : memref<32x1xf32, #tpu.memory_space<vmem>>, vector<16x1xf32>
    %45 = vector.broadcast %42 : vector<16x1xi32> to vector<16x128xi32>
    %46 = arith.cmpi eq, %11, %45 : vector<16x128xi32>
    %cst_16 = arith.constant 0.000000e+00 : f32
    %47 = vector.broadcast %cst_16 : f32 to vector<16x128xf32>
    %48 = arith.select %46, %17, %47 : vector<16x128xi1>, vector<16x128xf32>
    %cst_17 = arith.constant dense<0.000000e+00> : vector<16xf32>
    %49 = vector.multi_reduction <add>, %48, %cst_17 [1] : vector<16x128xf32> to vector<16xf32>
    %50 = vector.shape_cast %49 : vector<16xf32> to vector<16x1xf32>
    %51 = arith.addf %44, %50 : vector<16x1xf32>
    %52 = arith.index_cast %1 : i32 to index
    %c0_18 = arith.constant 0 : index
    %53 = vector.load %arg9[%52, %c0_18] : memref<32x1xf32, #tpu.memory_space<vmem>>, vector<16x1xf32>
    tpu.vector_store %arg9[%52, %c0_18], %51 {strides = array<i32>} : memref<32x1xf32, #tpu.memory_space<vmem>>, vector<16x1xf32>,
    %c2_i32 = arith.constant 2 : i32
    %54 = arith.cmpi eq, %arg0, %c2_i32 : i32
    %55 = arith.extui %54 : i1 to i32
    %c0_i32_19 = arith.constant 0 : i32
    %56 = arith.cmpi ne, %55, %c0_i32_19 : i32
    scf.if %56 {
      %57 = arith.index_cast %1 : i32 to index
      %c0_20 = arith.constant 0 : index
      %58 = vector.load %arg7[%57, %c0_20] : memref<32x1xf32, #tpu.memory_space<vmem>>, vector<16x1xf32>
      %59 = arith.index_cast %1 : i32 to index
      %c0_21 = arith.constant 0 : index
      %60 = vector.load %arg8[%59, %c0_21] : memref<32x1xf32, #tpu.memory_space<vmem>>, vector<16x1xf32>
      %61 = math.log %60 : vector<16x1xf32>
      %62 = arith.addf %58, %61 : vector<16x1xf32>
      %63 = arith.index_cast %1 : i32 to index
      %c0_22 = arith.constant 0 : index
      %64 = vector.load %arg9[%63, %c0_22] : memref<32x1xf32, #tpu.memory_space<vmem>>, vector<16x1xf32>
      %65 = arith.subf %62, %64 : vector<16x1xf32>
      %66 = arith.index_cast %1 : i32 to index
      %c0_23 = arith.constant 0 : index
      %67 = vector.load %arg6[%66, %c0_23] : memref<32x1xf32, #tpu.memory_space<vmem>>, vector<16x1xf32>
      tpu.vector_store %arg6[%66, %c0_23], %65 {strides = array<i32>} : memref<32x1xf32, #tpu.memory_space<vmem>>, vector<16x1xf32>,
    } else {
    }
    return
  }
  func.func @transform_0(%arg0: i32, %arg1: i32) -> (i32, i32) {
    %c0_i32 = arith.constant 0 : i32
    %c0_i32_0 = arith.constant 0 : i32
    return %arg1, %c0_i32 : i32, i32
  }
  func.func @transform_1(%arg0: i32, %arg1: i32) -> (i32, i32) {
    %c0_i32 = arith.constant 0 : i32
    %c0_i32_0 = arith.constant 0 : i32
    return %c0_i32, %arg0 : i32, i32
  }
  func.func @transform_2(%arg0: i32, %arg1: i32) -> (i32, i32) {
    %c0_i32 = arith.constant 0 : i32
    %c0_i32_0 = arith.constant 0 : i32
    return %c0_i32, %arg0 : i32, i32
  }
  func.func @transform_3(%arg0: i32, %arg1: i32) -> (i32, i32) {
    %c0_i32 = arith.constant 0 : i32
    %c0_i32_0 = arith.constant 0 : i32
    %c0_i32_1 = arith.constant 0 : i32
    return %c0_i32, %c0_i32_0 : i32, i32
  }
  func.func @transform_4(%arg0: i32, %arg1: i32) -> (i32, i32) {
    %c0_i32 = arith.constant 0 : i32
    %c0_i32_0 = arith.constant 0 : i32
    %c0_i32_1 = arith.constant 0 : i32
    return %c0_i32, %c0_i32_0 : i32, i32
  }
}

</mosaic_0001>

<bundles_post_ra>
// kernel: tpu_custom_call.1
= control target key start
LH: loop header
LB: loop body
LE: loop exit
PB: predicated region body
PF: predicated region fallthrough
CT: control target
= control target key end

     0   :  { %9 = vsyncpa [#allocation6], 0  ;;  %s970_s0 = inlined_call_operand.vmem [shape: bf16[32,32], index: 0, kind: input, shape index: {}]   ;;  %s971_s1 = inlined_call_operand.hbm [shape: bf16[32,300], index: 1, kind: input, shape index: {}]   ;;  %s972_s2 = inlined_call_operand.vmem [shape: f32[1,300], index: 2, kind: input, shape index: {}]   ;;  %s973_s3 = inlined_call_operand.vmem [shape: s32[32,1], index: 3, kind: input, shape index: {}]   ;;  %s974_s4 = inlined_call_operand.vmem [shape: f32[32,1], index: 4, kind: output, shape index: {}]  }
   0x1   :  { %11 = vsyncpa [#allocation6 + $0x1], 0  ;;  %s789_s15 = smov 0   ;;  %s791_s16 = smov 0  }
   0x2   :  { %s793_s17 = smov 0   ;;  %s795_s18 = smov 0  }
   0x3   :  { %s797_s19 = smov 0   ;;  %s799_s20 = smov 0  }
   0x4   :  { %s801_s21 = smov 0   ;;  %s803_s22 = smov 0  }
   0x5 LB: > { %s532_s23 = sadd.s32 4294967295, %s753_s22   ;;  %s26_s24 = sadd.s32 1, %s745_s20  ;;  %s753_s22 = sphi %s803_s22, %s17_s22   ;;  %s749_s21 = sphi %s801_s21, %s984_s21   ;;  %s745_s20 = sphi %s799_s20, %s983_s20   ;;  %s741_s19 = sphi %s797_s19, %s982_s19   ;;  %s737_s18 = sphi %s795_s18, %s981_s18   ;;  %s733_s17 = sphi %s793_s17, %s980_s17   ;;  %s729_s16 = sphi %s791_s16, %s979_s16   ;;  %s725_s15 = sphi %s789_s15, %s978_s15  }
   0x6   : > { %p27_p0 = scmp.ge.s32.totalorder %s26_s24, 2  ;;  %s29_s25 = sadd.s32 1, %s749_s21 }
   0x7   : > { %s62_s26 = sadd.s32 1, %s733_s17  ;;  %p69_p1 = scmp.ne.s32.totalorder %s733_s17, %s729_s16 }
   0x8   : > { %s986_s24 = smov (%p27_p0, %s26_s24), 0  ;;  %s988_s25 = smov (!%p27_p0, %s29_s25), %s749_s21 }
   0x9   : > { %p70_p2 = scmp.eq.s32.totalorder %s753_s22, 0  ;;  %p75_p3 = scmp.ne.s32.totalorder %s729_s16, %s725_s15 }
   0xa   : > { %p31_p4 = scmp.ge.s32.totalorder %s988_s25, 3  ;;  %p76_p5 = scmp.eq.s32.totalorder %s532_s23, 0 }
   0xb   : > { %p838_p6 = por %p70_p2, %p69_p1  ;;  %p569_p8 = scmp.lt.s32.totalorder %s753_s22, 6 }
   0xc   : > { %s990_s25 = smov (%p31_p4, %s988_s25), 0  ;;  %p844_p7 = por %p76_p5, %p75_p3 }
   0xd   : > { %s59_s29 = ssub.s32 %s749_s21, %s990_s25  ;;  %s179_s30 = sand.u32 1, %s733_s17  }
   0xe   : > { %p60_p9 = scmp.eq.s32.totalorder %s59_s29, 0  ;;  %s535_s5 = sshll.u32 %s179_s30, 4 }
   0xf   : > { %s536_s6 = sshll.u32 %s749_s21, 6  ;;  %s183_s11 = scalar_lea.vmem [#allocation5], %s535_s5 }
  0x10   : > { %s854_s7 = scalar_select %p60_p9, %s733_s17, %s62_s26  }
  0x11   : > { %s188_s10 = scalar_lea.hbm %s971_s1, %s536_s6  ;;  %s189_s12 = sshll.u32 %s183_s11, 4  ;;  %s190_s12 = int_to_ptr.vmem [resolvable:$true] %s189_s12 }
  0x12   : > { %p861_p10 = pnand %p569_p8, %p838_p6  ;;  %p537_p11 = scmp.ge.s32.totalorder %s753_s22, 1 }
  0x13   : > { %s180_s14 = scalar_lea.sflag [#allocation6], %s179_s30  ;;  %s672_s15 = scalar_lea.vmem %s190_s12, 256 }
  0x14   : > { %p661_p12 = pneg %p861_p10  ;;  %p673_p13 = scmp.ne.s32.totalorder %s190_s12, %s672_s15 }
  0x15   : > { %s755_s23 = smov [#allocation5]  }
  0x16   : > { %p675_p0 = pnand %p673_p13, %p661_p12  ;;  %s677_s26 = sshll.u32 %s755_s23, 4  ;;  %s678_s26 = int_to_ptr.vmem [resolvable:$false] %s677_s26 }
  0x17   : > { %s679_s29 = scalar_lea.vmem %s678_s26, 512  ;;  %p680_p2 = scmp.lt.s32.totalorder %s190_s12, %s678_s26 }
  0x18   : > { %p676_p1 = pneg %p675_p0  ;;  %p681_p3 = scmp.lt.s32.totalorder %s679_s29, %s672_s15 }
  0x1a   : > { %p682_p4 = por %p681_p3, %p680_p2 }
  0x1c   : > { %p683_p5 = pnand %p682_p4, %p676_p1 }
  0x1e   : > { %686 = shalt.err (!%p683_p5)
}
  0x1f   : > { %s756_s27 = smov 192   ;;  %s757_s30 = smov 64  }
  0x20   : > { %s758_s5 = smov 4   ;;  %p203_p6 = scmp.lt.s32.totalorder %s753_s22, 7 }
  0x21   : > { %568 = dma.hbm_to_vmem [thread:$0]  (!%p861_p10), %s188_s10, 256, %s190_s12, %s180_s14, %s756_s27, %s757_s30, %s758_s5  }
  0x22   : > { %p204_p8 = pnand %p537_p11, %p203_p6 }
  0x23   : > { %s209_s6 = sand.u32 (!%p204_p8), 1, %s729_s16  }
  0x24   : > { %207 = sbr.rel (%p204_p8) target bundleno = 716 (0x2cc), region = 36  ;;  %s874_s8 = sshll.u32 (!%p204_p8), %s209_s6, 4 }
  0x25   : > { %s210_s9 = scalar_lea.sflag (!%p204_p8), [#allocation6], %s209_s6  ;;  %s213_s11 = scalar_lea.vmem (!%p204_p8), [#allocation5], %s874_s8 }
  0x29   : > { %720 = dma.done.wait (%p844_p7), %s210_s9, 256  }
  0x2a   : > { %722 = vsyncadd (%p844_p7), %s210_s9, 4294967040  ;;  %s539_s10 = sshll.u32 %s737_s18, 1  ;;  %p247_p9 = scmp.lt.s32.totalorder %s741_s19, 2 }
  0x2b   : > { %p242_p10 = scmp.lt.s32.totalorder %s539_s10, 3  ;;  %s884_s12 = sshll.u32 %s737_s18, 4 }
  0x2c   : > { %s887_s13 = scalar_select %p247_p9, %s741_s19, 2 }
  0x2d   : > { %s992_s10 = smov (!%p242_p10, %s539_s10), 3  ;;  %p542_p7 = scmp.ne.s32.totalorder %s741_s19, 0 }
  0x2e   : > { %s249_s23 = scalar_lea.vmem %s972_s2, %s887_s13  ;;  %s540_s26 = sshll.u32 %s992_s10, 2 }
  0x2f   : > { %s245_s27 = scalar_lea.vmem %s970_s0, %s540_s26  ;;  %255 = sbr.rel (%p542_p7) target bundleno = 56 (0x38), region = 44 }
  0x30   : > { %s256_s18 = scalar_lea.vmem (!%p542_p7), [#allocation2], %s884_s12  ;;  %s260_s30 = scalar_lea.vmem (!%p542_p7), [#allocation3], %s884_s12 }
  0x31   : > { %s263_s5 = scalar_lea.vmem (!%p542_p7), [#allocation4], %s884_s12 }
  0x34   : > { %vm257_vm0 = vcmask 7168   ;;  %v759_v0 = vmov -inf   ;;  %v760_v1 = vmov 0.0  }
  0x35   : > { %258 = vst.msk [vmem:[%s256_s18] sm:$0xff] %vm257_vm0, %v759_v0  ;;  %259 = vst.msk [vmem:[%s256_s18 + $0x8] sm:$0xff] %vm257_vm0, %v759_v0 }
  0x36   : > { %261 = vst.msk [vmem:[%s260_s30] sm:$0xff] %vm257_vm0, %v760_v1  ;;  %262 = vst.msk [vmem:[%s260_s30 + $0x8] sm:$0xff] %vm257_vm0, %v760_v1 }
  0x37   : > { %264 = vst.msk [vmem:[%s263_s5] sm:$0xff] %vm257_vm0, %v760_v1  ;;  %265 = vst.msk [vmem:[%s263_s5 + $0x8] sm:$0xff] %vm257_vm0, %v760_v1 }
  0x38 PF: > { %v644_v2 = vld [vmem:[%s213_s11 + $0x8] sm:$0xff]   ;;  %v761_v3 = vmov 0.0   ;;  %v645_v4 = vld [vmem:[%s213_s11] sm:$0xff]   ;;  %vm762_vm1 = vmmov 0   ;;  %vm296_vm2 = vcmask 261120   ;;  %v763_v6 = vmov 0   ;;  %s396_s15 = scalar_lea.vmem %s973_s3, %s884_s12 }
  0x39   : > { %555 = vmatprep.subr.bf16.mxu0 %v761_v3  ;;  %559 = vmatprep.mubr.msk.bf16.mxu0 %vm762_vm1, %v761_v3  ;;  %v646_v5 = vld [vmem:[%s245_s27] sm:$0xff]   ;;  %s548_s6 = sshll.u32 %s741_s19, 7  ;;  %v341_v7 = vlaneseq  ;;  %s915_s13 = scalar_lea.vmem [#allocation2], %s884_s12  ;;  %vm391_vm4 = vcmask 7168   ;;  %v398_v28 = vld [vmem:[%s396_s15 + $0x8] sm:$0xff] }
  0x3a   : > { %556 = vmatpush3.bf16.msra.mxu0 %v644_v2  ;;  %643 = vset.pattern.permute.xlu0 %v763_v6  ;;  %s344_s9 = ssub.s32 300, %s548_s6  ;;  %v543_v10 = vld [vmem:[%s249_s23] ss:$0 sm:$0xff]  ;;  %v399_v20 = vstv %s548_s6  ;;  %s924_s23 = scalar_lea.vmem [#allocation4], %s884_s12 }
  0x3b   : > { %557 = vmatprep.subr.bf16.mxu0 %v761_v3  ;;  %642 = vset.pattern.permute.xlu1 %v763_v6  ;;  %v342_v8 = vand.u32 127, %v341_v7  ;;  %v345_v9 = vstv %s344_s9  ;;  %v397_v19 = vld [vmem:[%s396_s15] sm:$0xff]  ;;  %v401_v31 = vsub.s32 %v398_v28, %v399_v20  ;;  %s364_s26 = scalar_lea.vmem [#allocation3], %s884_s12  ;;  %p549_p11 = scmp.ne.s32.totalorder %s741_s19, 2 }
  0x3c   : > { %v400_v21 = vsub.s32 %v397_v19, %v399_v20  ;;  %v350_v22 = vld [vmem:[%s915_s13] sm:$0xff]  ;;  %v351_v25 = vld [vmem:[%s915_s13 + $0x8] sm:$0xff]  ;;  %s441_s29 = scalar_lea.vmem (!%p549_p11), %s974_s4, %s884_s12 }
  0x3d   : > { %vm346_vm3 = vcmp.lt.s32.totalorder %v342_v8, %v345_v9  ;;  %v365_v50 = vld [vmem:[%s364_s26] sm:$0xff]  ;;  %v366_v54 = vld [vmem:[%s364_s26 + $0x8] sm:$0xff] }
  0x3e   : > { %558 = vmatpush3.bf16.msra.mxu0 %v645_v4  ;;  %v403_v43 = vld [vmem:[%s924_s23] sm:$0xff]  ;;  %v404_v59 = vld [vmem:[%s924_s23 + $0x8] sm:$0xff] }
  0x41   : > { %560 = vmatmul.mubr.msk.bf16.vlgmr.msra.gmra.mxu0 %vm296_vm2, %v646_v5 }
 0x101   : > { %v334_v11 = vpop.f32.mrf.mxu0 }
 0x102   : > { %v335_v12 = vadd.f32 %v543_v10, %v334_v11 }
 0x103   : > { %v561_v13 = vpop.f32.mrf.mxu0 }
 0x104   : > { %v347_v14 = vsel %vm346_vm3, %v335_v12, -inf }
 0x105   : > { %352 = vmax.xlane.f32.xlu0 %v347_v14  ;;  %v337_v15 = vpop.f32.mrf.mxu0 }
 0x106   : > { %v338_v16 = vadd.f32 %v543_v10, %v337_v15 }
 0x107   : > { %v562_v17 = vpop.f32.mrf.mxu0 }
 0x108   : > { %v348_v18 = vsel %vm346_vm3, %v338_v16, -inf }
 0x109   : > { %354 = vmax.xlane.f32.xlu0 %v348_v18 }
 0x11f   : > { %406 = vperm.xlu0 %643, %v400_v21  }
 0x18e   : > { %v353_v23 = vpop.xlane.xlu0 %352 }
 0x18f   : > { %v356_v24 = vmax.f32 %v350_v22, %v353_v23 }
 0x191   : > { %v358_v26 = vsub.f32 %v350_v22, %v356_v24  ;;  %394 = vst.msk [vmem:[%s915_s13] sm:$0xff] %vm391_vm4, %v356_v24  ;;  %371 = vperm.xlu1 %642, %v356_v24  }
 0x192   : > { %v355_v27 = vpop.xlane.xlu0 %354 }
 0x193   : > { %v357_v29 = vmax.f32 %v351_v25, %v355_v27  ;;  %v360_v47 = vmul.f32 1.442695, %v358_v26 }
 0x195   : > { %v359_v30 = vsub.f32 %v351_v25, %v357_v29  ;;  %395 = vst.msk [vmem:[%s915_s13 + $0x8] sm:$0xff] %vm391_vm4, %v357_v29  ;;  %376 = vperm.xlu1 %642, %v357_v29  }
 0x197   : > { %v362_v48 = vmul.f32 1.442695, %v359_v30 }
 0x199   : > { %409 = vperm.xlu1 %642, %v401_v31  }
 0x19a   : > { %v407_v32 = vpop.permute.xlu0 %406 }
 0x19b   : > { %vm411_vm5 = vcmp.eq.s32.totalorder %v342_v8, %v407_v32 }
 0x19c   : > { %v413_v33 = vsel %vm411_vm5, %v347_v14, 0.0 }
 0x19d   : > { %415 = vadd.xlane.f32.xlu0 %v413_v33 }
 0x20c   : > { %v372_v34 = vpop.permute.xlu1 %371 }
 0x20d   : > { %v379_v35 = vsub.f32 %v347_v14, %v372_v34 }
 0x20f   : > { %v381_v36 = vmul.f32 1.442695, %v379_v35 }
 0x210   : > { %v377_v37 = vpop.permute.xlu1 %376 }
 0x211   : > { %647 = vpow2.f32 %v381_v36  ;;  %v380_v38 = vsub.f32 %v348_v18, %v377_v37 }
 0x213   : > { %v383_v39 = vmul.f32 1.442695, %v380_v38 }
 0x214   : > { %v410_v41 = vpop.permute.xlu1 %409 }
 0x215   : > { %649 = vpow2.f32 %v383_v39  ;;  %vm412_vm6 = vcmp.eq.s32.totalorder %v342_v8, %v410_v41 }
 0x216   : > { %v414_v45 = vsel %vm412_vm6, %v348_v18, 0.0  ;;  %651 = vpow2.f32 %v360_v47 }
 0x217   : > { %653 = vpow2.f32 %v362_v48 }
 0x21e   : > { %v648_v40 = vpop.eup %647 }
 0x21f   : > { %385 = vadd.xlane.f32.xlu1 %v648_v40 }
 0x222   : > { %v650_v42 = vpop.eup %649 }
 0x223   : > { %387 = vadd.xlane.f32.xlu1 %v650_v42  ;;  %v652_v49 = vpop.eup %651 }
 0x224   : > { %v367_v51 = vmul.f32 %v652_v49, %v365_v50  ;;  %v654_v52 = vpop.eup %653 }
 0x225   : > { %v368_v56 = vmul.f32 %v654_v52, %v366_v54 }
 0x226   : > { %v416_v44 = vpop.xlane.xlu0 %415 }
 0x227   : > { %v419_v46 = vadd.f32 %v416_v44, %v403_v43  ;;  %417 = vadd.xlane.f32.xlu1 %v414_v45 }
 0x229   : > { %421 = vst.msk [vmem:[%s924_s23] sm:$0xff] %vm391_vm4, %v419_v46 }
 0x2a8   : > { %v386_v53 = vpop.xlane.xlu1 %385 }
 0x2a9   : > { %v389_v55 = vadd.f32 %v386_v53, %v367_v51 }
 0x2ab   : > { %392 = vst.msk [vmem:[%s364_s26] sm:$0xff] %vm391_vm4, %v389_v55 }
 0x2ac   : > { %v388_v57 = vpop.xlane.xlu1 %387 }
 0x2ad   : > { %v390_v58 = vadd.f32 %v388_v57, %v368_v56 }
 0x2af   : > { %393 = vst.msk [vmem:[%s364_s26 + $0x8] sm:$0xff] %vm391_vm4, %v390_v58  ;;  %426 = sbr.rel (%p549_p11) target bundleno = 716 (0x2cc), region = 48 }
 0x2b0   : > { %v418_v60 = vpop.xlane.xlu1 %417 }
 0x2b1   : > { %v420_v61 = vadd.f32 %v418_v60, %v404_v59 }
 0x2b3   : > { %422 = vst.msk [vmem:[%s924_s23 + $0x8] sm:$0xff] %vm391_vm4, %v420_v61 }
 0x2b4   : > { %v429_v62 = vld [vmem:[%s364_s26] sm:$0xff]  ;;  %v428_v4 = vld [vmem:[%s915_s13 + $0x8] sm:$0xff] }
 0x2b5   : > { %655 = vlog2.f32 %v429_v62  ;;  %v427_v1 = vld [vmem:[%s915_s13] sm:$0xff] }
 0x2b6   : > { %v430_v63 = vld [vmem:[%s364_s26 + $0x8] sm:$0xff]  ;;  %v437_v5 = vld [vmem:[%s924_s23] sm:$0xff] }
 0x2b7   : > { %657 = vlog2.f32 %v430_v63 }
 0x2ba   : > { %v438_v8 = vld [vmem:[%s924_s23 + $0x8] sm:$0xff] }
 0x2c2   : > { %v656_v0 = vpop.eup %655 }
 0x2c3   : > { %v432_v3 = vmul.f32 0.6931472, %v656_v0 }
 0x2c4   : > { %v658_v2 = vpop.eup %657 }
 0x2c5   : > { %v434_v6 = vmul.f32 0.6931472, %v658_v2  ;;  %v435_v7 = vadd.f32 %v432_v3, %v427_v1 }
 0x2c7   : > { %v436_v9 = vadd.f32 %v434_v6, %v428_v4  ;;  %v439_v10 = vsub.f32 %v435_v7, %v437_v5 }
 0x2c9   : > { %v440_v11 = vsub.f32 %v436_v9, %v438_v8  ;;  %442 = vst.msk [vmem:[%s441_s29] sm:$0xff] %vm391_vm4, %v439_v10 }
 0x2cb   : > { %443 = vst.msk [vmem:[%s441_s29 + $0x8] sm:$0xff] %vm391_vm4, %v440_v11 }
 0x2cc PF: > { %s17_s22 = sadd.s32 1, %s753_s22   ;;  %s978_s15 = smov %s729_s16 }
 0x2cd   : > { %p14_p12 = scmp.ge.s32.totalorder %s17_s22, 8   ;;  %s979_s16 = smov %s733_s17 }
 0x2ce   : > { %s980_s17 = smov %s854_s7  ;;  %s981_s18 = smov %s745_s20 }
 0x2cf   : > { %s982_s19 = smov %s749_s21  ;;  %s983_s20 = smov %s986_s24 }
 0x2d0   : > { %s984_s21 = smov %s990_s25  ;;  %16 = sbr.rel (!%p14_p12) target bundleno = 5 (0x5), region = 94 }
 0x2d5   :  { %455 = vsyncpa [#allocation6], 1 }
 0x2d6   :  { %457 = vsyncpa [#allocation6 + $0x1], 1 }

</bundles_post_ra>
